<compile_context>
chip_gen: v7x
topology: tpu7x:2x2x1
jax: 0.10.0
libtpu: 0.0.40
codegen_flags: <defaults>
</compile_context>

<pallas_src>
import math

import jax
import jax.numpy as jnp
import numpy as np
from jax import lax
from jax.experimental import pallas as pl
from jax.experimental.pallas import tpu as pltpu


# ----------------------------------------------------------------------------
# Pallas kernel: fused bidirectional recurrence (input projection pre-hoisted).
# ----------------------------------------------------------------------------
def bilstm_kernel(gx_ref, w_hh_ref, out_ref, hn_ref):
    # gx_ref:   (T, B, 8H)  precomputed x-projection + fused bias for both
    #                       directions, backward half already time-reversed;
    #                       column layout [i_f,i_b | f_f,f_b | o_f,o_b | g_f,g_b]
    #                       with the i/f/o columns pre-scaled by 0.5.
    # w_hh_ref: (2H, 8H)    block-diagonal recurrent weights, same layout /
    #                       same 0.5 pre-scale on i/f/o columns.
    # out_ref:  (T, B, 2H)  per-step output: [..., :H] forward hidden at time t,
    #                       [..., H:] backward hidden at original time T-1-t
    #                       (wrapper reverses it).
    # hn_ref:   (2, B, H)   final hidden state per direction (PyTorch h_n).
    T, B, G = gx_ref.shape
    H2 = G // 4          # 2H
    H = H2 // 2

    w_hh = w_hh_ref[...]

    def body(t, carry):
        h, c = carry                                              # (B, 2H) each
        gates = (jnp.dot(h, w_hh, preferred_element_type=jnp.float32)
                 + gx_ref[t])                                     # (B, 8H)
        # Single full-width EUP push; i/f/o columns were pre-scaled by 0.5 so
        # sigmoid(z) = 0.5 * tanh(0.5 * z) + 0.5 = 0.5 * tg + 0.5.
        tg = jnp.tanh(gates)                                      # (B, 8H)
        ifo = 0.5 * tg[:, 0:3 * H2] + 0.5                         # (B, 6H)
        g = tg[:, 3 * H2:4 * H2]                                  # (B, 2H)
        i = ifo[:, 0:H2]
        f = ifo[:, H2:2 * H2]
        o = ifo[:, 2 * H2:3 * H2]
        c_new = f * c + i * g
        h_new = o * jnp.tanh(c_new)
        out_ref[t] = h_new                                        # one full slab
        return (h_new, c_new)

    zeros = jnp.zeros((B, H2), jnp.float32)
    h, _ = lax.fori_loop(0, T, body, (zeros, zeros), unroll=True)
    hn_ref[0] = h[:, 0:H]
    hn_ref[1] = h[:, H:H2]


# ----------------------------------------------------------------------------
# Wrapper: weight re-layout, hoisted input GEMM, pallas_call, batch-first out.
# ----------------------------------------------------------------------------
def _reorder_cols(w, H):
    # Last dim blocks [i, f, g, o] (PyTorch) -> [i, f, o, g].
    return jnp.concatenate(
        [w[..., 0:H], w[..., H:2 * H], w[..., 3 * H:4 * H], w[..., 2 * H:3 * H]],
        axis=-1)


def _scale_ifo(w, H):
    # Pre-scale the i/f/o gate columns (first 3H of the [i,f,o,g]-ordered last
    # dim) by 0.5 so the kernel can use one full-width tanh for all gates.
    return jnp.concatenate([0.5 * w[..., :3 * H], w[..., 3 * H:]], axis=-1)


def _interleave_gates(a, b, H):
    # a, b: (..., 4H) -> (..., 8H) interleaved per-gate: [a_i, b_i, a_f, b_f, ...].
    lead = a.shape[:-1]
    a4 = a.reshape(lead + (4, H))
    b4 = b.reshape(lead + (4, H))
    return jnp.stack([a4, b4], axis=-2).reshape(lead + (8 * H,))


def bilstm_encoder(inputs, params):
    """inputs: (B, T, D) float32 -> (memory (B, T, 2H), states (2, B, H))."""
    B, T, D = inputs.shape
    H = params["w_hh_f"].shape[1]
    H2 = 2 * H
    f32 = jnp.float32
    prec = lax.Precision.HIGHEST

    x_tm = jnp.transpose(inputs, (1, 0, 2)).astype(f32)           # (T, B, D)

    # Per-direction weights, transposed, column-reordered to [i, f, o, g] and
    # i/f/o columns pre-scaled by 0.5 (single-tanh gate trick).
    w_ih_f = _scale_ifo(_reorder_cols(params["w_ih_f"].T.astype(f32), H), H)  # (D, 4H)
    w_ih_b = _scale_ifo(_reorder_cols(params["w_ih_b"].T.astype(f32), H), H)
    w_hh_f = _scale_ifo(_reorder_cols(params["w_hh_f"].T.astype(f32), H), H)  # (H, 4H)
    w_hh_b = _scale_ifo(_reorder_cols(params["w_hh_b"].T.astype(f32), H), H)
    b_f = _scale_ifo(_reorder_cols((params["b_ih_f"] + params["b_hh_f"]).astype(f32), H), H)
    b_b = _scale_ifo(_reorder_cols((params["b_ih_b"] + params["b_hh_b"]).astype(f32), H), H)

    # Hoisted input projection: one big GEMM per direction (M = T*B), bias fused,
    # backward direction pre-reversed in time.
    gx_f = jnp.einsum("tbd,dg->tbg", x_tm, w_ih_f, precision=prec) + b_f
    gx_b = jnp.einsum("tbd,dg->tbg", x_tm[::-1], w_ih_b, precision=prec) + b_b
    gx = _interleave_gates(gx_f, gx_b, H)                         # (T, B, 8H)

    # Block-diagonal recurrent weight matching the interleaved column layout.
    zero = jnp.zeros((H, 4 * H), f32)
    w_hh_top = _interleave_gates(w_hh_f, zero, H)                 # (H, 8H)
    w_hh_bot = _interleave_gates(zero, w_hh_b, H)                 # (H, 8H)
    w_hh_blk = jnp.concatenate([w_hh_top, w_hh_bot], axis=0)      # (2H, 8H)

    cost = pl.CostEstimate(
        flops=int(2 * T * B * H2 * 8 * H + 8 * T * B * 8 * H),
        transcendentals=int(10 * T * B * H),
        bytes_accessed=int(4 * (T * B * 8 * H + H2 * 8 * H + T * B * H2 + 2 * B * H)),
    )

    vmem = pl.BlockSpec(memory_space=pltpu.MemorySpace.VMEM)
    out_tm, h_n = pl.pallas_call(
        bilstm_kernel,
        out_shape=(
            jax.ShapeDtypeStruct((T, B, H2), f32),
            jax.ShapeDtypeStruct((2, B, H), f32),
        ),
        in_specs=[vmem, vmem],
        out_specs=(vmem, vmem),
        cost_estimate=cost,
    )(gx, w_hh_blk)

    # Batch-first transpose + time-reverse of the backward half (cheap XLA ops,
    # fused outside the kernel so the kernel stores one full slab per step).
    out_bt = jnp.transpose(out_tm, (1, 0, 2))                     # (B, T, 2H)
    memory = jnp.concatenate([out_bt[..., :H], out_bt[:, ::-1, H:]], axis=-1)
    return memory, h_n


# ----------------------------------------------------------------------------
# Pure-JAX reference (mirrors nn.LSTM batch_first=True, bidirectional=True).
# ----------------------------------------------------------------------------
def bilstm_ref(inputs, params):
    B, T, D = inputs.shape
    H = params["w_hh_f"].shape[1]
    prec = lax.Precision.HIGHEST

    def run(xs, w_ih, w_hh, b_ih, b_hh):
        def step(carry, x_t):
            h, c = carry
            gates = (jnp.dot(x_t, w_ih.T, precision=prec)
                     + jnp.dot(h, w_hh.T, precision=prec) + b_ih + b_hh)
            i, f, g, o = jnp.split(gates, 4, axis=-1)
            i, f, o = jax.nn.sigmoid(i), jax.nn.sigmoid(f), jax.nn.sigmoid(o)
            g = jnp.tanh(g)
            c = f * c + i * g
            h = o * jnp.tanh(c)
            return (h, c), h

        init = (jnp.zeros((B, H), jnp.float32), jnp.zeros((B, H), jnp.float32))
        (h, _), ys = lax.scan(step, init, jnp.transpose(xs, (1, 0, 2)))
        return jnp.transpose(ys, (1, 0, 2)), h

    out_f, h_f = run(inputs, params["w_ih_f"], params["w_hh_f"],
                     params["b_ih_f"], params["b_hh_f"])
    out_b, h_b = run(inputs[:, ::-1, :], params["w_ih_b"], params["w_hh_b"],
                     params["b_ih_b"], params["b_hh_b"])
    out_b = out_b[:, ::-1, :]
    memory = jnp.concatenate([out_f, out_b], axis=-1)
    states = jnp.stack([h_f, h_b], axis=0)
    return memory, states


# ----------------------------------------------------------------------------
# Deterministic parameter init (PyTorch nn.LSTM shapes, uniform(-1/sqrt(H), 1/sqrt(H))).
# ----------------------------------------------------------------------------
def init_params(key, input_size, hidden_size):
    k = 1.0 / math.sqrt(hidden_size)
    names_shapes = [
        ("w_ih_f", (4 * hidden_size, input_size)),
        ("w_hh_f", (4 * hidden_size, hidden_size)),
        ("b_ih_f", (4 * hidden_size,)),
        ("b_hh_f", (4 * hidden_size,)),
        ("w_ih_b", (4 * hidden_size, input_size)),
        ("w_hh_b", (4 * hidden_size, hidden_size)),
        ("b_ih_b", (4 * hidden_size,)),
        ("b_hh_b", (4 * hidden_size,)),
    ]
    params = {}
    keys = jax.random.split(key, len(names_shapes))
    for (name, shape), sub in zip(names_shapes, keys):
        params[name] = jax.random.uniform(sub, shape, jnp.float32, -k, k)
    return params


if __name__ == "__main__":
    # Small shapes consistent with the module: batch=2, seq=8, emb=16, hidden=32.
    B, T, D, H = 2, 8, 16, 32
    key = jax.random.PRNGKey(0)
    k_x, k_p = jax.random.split(key)
    x = jax.random.normal(k_x, (B, T, D), jnp.float32)
    params = init_params(k_p, D, H)

    encoder = jax.jit(bilstm_encoder)
    memory, states = jax.block_until_ready(encoder(x, params))
    mem_ref, st_ref = jax.block_until_ready(bilstm_ref(x, params))

    assert memory.shape == (B, T, 2 * H)
    assert states.shape == (2, B, H)
    np.testing.assert_allclose(np.asarray(memory), np.asarray(mem_ref),
                               rtol=2e-5, atol=2e-5)
    np.testing.assert_allclose(np.asarray(states), np.asarray(st_ref),
                               rtol=2e-5, atol=2e-5)
    print("KERNEL_OK")
</pallas_src>

<mosaic_0001>
module attributes {stable_mosaic.version = 11 : i64} {
  func.func @bilstm_kernel(%arg0: memref<8x2x256xf32, #tpu.memory_space<vmem>>, %arg1: memref<64x256xf32, #tpu.memory_space<vmem>>, %arg2: memref<8x2x64xf32, #tpu.memory_space<vmem>>, %arg3: memref<2x2x32xf32, #tpu.memory_space<vmem>>) attributes {dimension_semantics = [], scalar_prefetch = 0 : i64, scratch_operands = 0 : i64, tpu.core_type = #tpu.core_type<tc>} {
    %c0 = arith.constant 0 : index
    %c0_0 = arith.constant 0 : index
    %0 = vector.load %arg1[%c0, %c0_0] : memref<64x256xf32, #tpu.memory_space<vmem>>, vector<64x256xf32>
    %cst = arith.constant 0.000000e+00 : f32
    %1 = vector.broadcast %cst : f32 to vector<2x64xf32>
    %c0_i32 = arith.constant 0 : i32
    %cst_1 = arith.constant dense<0.000000e+00> : vector<2x256xf32>
    %2 = tpu.matmul %1, %0, %cst_1 {dimension_numbers = #tpu.dot_dimension_numbers<[1], [0], [0], [1], [0, 0, 1, 1], [], []>} : vector<2x64xf32>, vector<64x256xf32>, vector<2x256xf32> -> vector<2x256xf32>
    %3 = arith.index_cast %c0_i32 : i32 to index
    %c0_2 = arith.constant 0 : index
    %c0_3 = arith.constant 0 : index
    %4 = vector.load %arg0[%3, %c0_2, %c0_3] : memref<8x2x256xf32, #tpu.memory_space<vmem>>, vector<1x2x256xf32>
    %5 = vector.shape_cast %4 : vector<1x2x256xf32> to vector<2x256xf32>
    %6 = arith.addf %2, %5 : vector<2x256xf32>
    %7 = math.tanh %6 : vector<2x256xf32>
    %8 = vector.extract_strided_slice %7 {offsets = [0, 0], sizes = [2, 192], strides = [1, 1]} : vector<2x256xf32> to vector<2x192xf32>
    %cst_4 = arith.constant 5.000000e-01 : f32
    %9 = vector.broadcast %cst_4 : f32 to vector<2x192xf32>
    %10 = arith.mulf %9, %8 : vector<2x192xf32>
    %cst_5 = arith.constant 5.000000e-01 : f32
    %11 = vector.broadcast %cst_5 : f32 to vector<2x192xf32>
    %12 = arith.addf %10, %11 : vector<2x192xf32>
    %13 = vector.extract_strided_slice %7 {offsets = [0, 192], sizes = [2, 64], strides = [1, 1]} : vector<2x256xf32> to vector<2x64xf32>
    %14 = vector.extract_strided_slice %12 {offsets = [0, 0], sizes = [2, 64], strides = [1, 1]} : vector<2x192xf32> to vector<2x64xf32>
    %15 = vector.extract_strided_slice %12 {offsets = [0, 64], sizes = [2, 64], strides = [1, 1]} : vector<2x192xf32> to vector<2x64xf32>
    %16 = vector.extract_strided_slice %12 {offsets = [0, 128], sizes = [2, 64], strides = [1, 1]} : vector<2x192xf32> to vector<2x64xf32>
    %17 = arith.mulf %15, %1 : vector<2x64xf32>
    %18 = arith.mulf %14, %13 : vector<2x64xf32>
    %19 = arith.addf %17, %18 : vector<2x64xf32>
    %20 = math.tanh %19 : vector<2x64xf32>
    %21 = arith.mulf %16, %20 : vector<2x64xf32>
    %22 = arith.index_cast %c0_i32 : i32 to index
    %c0_6 = arith.constant 0 : index
    %c0_7 = arith.constant 0 : index
    %23 = vector.load %arg2[%22, %c0_6, %c0_7] : memref<8x2x64xf32, #tpu.memory_space<vmem>>, vector<1x2x64xf32>
    %24 = vector.shape_cast %23 : vector<1x2x64xf32> to vector<2x64xf32>
    %25 = vector.shape_cast %21 : vector<2x64xf32> to vector<1x2x64xf32>
    tpu.vector_store %arg2[%22, %c0_6, %c0_7], %25 {strides = array<i32>} : memref<8x2x64xf32, #tpu.memory_space<vmem>>, vector<1x2x64xf32>,
    %c1_i32 = arith.constant 1 : i32
    %cst_8 = arith.constant dense<0.000000e+00> : vector<2x256xf32>
    %26 = tpu.matmul %21, %0, %cst_8 {dimension_numbers = #tpu.dot_dimension_numbers<[1], [0], [0], [1], [0, 0, 1, 1], [], []>} : vector<2x64xf32>, vector<64x256xf32>, vector<2x256xf32> -> vector<2x256xf32>
    %27 = arith.index_cast %c1_i32 : i32 to index
    %c0_9 = arith.constant 0 : index
    %c0_10 = arith.constant 0 : index
    %28 = vector.load %arg0[%27, %c0_9, %c0_10] : memref<8x2x256xf32, #tpu.memory_space<vmem>>, vector<1x2x256xf32>
    %29 = vector.shape_cast %28 : vector<1x2x256xf32> to vector<2x256xf32>
    %30 = arith.addf %26, %29 : vector<2x256xf32>
    %31 = math.tanh %30 : vector<2x256xf32>
    %32 = vector.extract_strided_slice %31 {offsets = [0, 0], sizes = [2, 192], strides = [1, 1]} : vector<2x256xf32> to vector<2x192xf32>
    %cst_11 = arith.constant 5.000000e-01 : f32
    %33 = vector.broadcast %cst_11 : f32 to vector<2x192xf32>
    %34 = arith.mulf %33, %32 : vector<2x192xf32>
    %cst_12 = arith.constant 5.000000e-01 : f32
    %35 = vector.broadcast %cst_12 : f32 to vector<2x192xf32>
    %36 = arith.addf %34, %35 : vector<2x192xf32>
    %37 = vector.extract_strided_slice %31 {offsets = [0, 192], sizes = [2, 64], strides = [1, 1]} : vector<2x256xf32> to vector<2x64xf32>
    %38 = vector.extract_strided_slice %36 {offsets = [0, 0], sizes = [2, 64], strides = [1, 1]} : vector<2x192xf32> to vector<2x64xf32>
    %39 = vector.extract_strided_slice %36 {offsets = [0, 64], sizes = [2, 64], strides = [1, 1]} : vector<2x192xf32> to vector<2x64xf32>
    %40 = vector.extract_strided_slice %36 {offsets = [0, 128], sizes = [2, 64], strides = [1, 1]} : vector<2x192xf32> to vector<2x64xf32>
    %41 = arith.mulf %39, %19 : vector<2x64xf32>
    %42 = arith.mulf %38, %37 : vector<2x64xf32>
    %43 = arith.addf %41, %42 : vector<2x64xf32>
    %44 = math.tanh %43 : vector<2x64xf32>
    %45 = arith.mulf %40, %44 : vector<2x64xf32>
    %46 = arith.index_cast %c1_i32 : i32 to index
    %c0_13 = arith.constant 0 : index
    %c0_14 = arith.constant 0 : index
    %47 = vector.load %arg2[%46, %c0_13, %c0_14] : memref<8x2x64xf32, #tpu.memory_space<vmem>>, vector<1x2x64xf32>
    %48 = vector.shape_cast %47 : vector<1x2x64xf32> to vector<2x64xf32>
    %49 = vector.shape_cast %45 : vector<2x64xf32> to vector<1x2x64xf32>
    tpu.vector_store %arg2[%46, %c0_13, %c0_14], %49 {strides = array<i32>} : memref<8x2x64xf32, #tpu.memory_space<vmem>>, vector<1x2x64xf32>,
    %c2_i32 = arith.constant 2 : i32
    %cst_15 = arith.constant dense<0.000000e+00> : vector<2x256xf32>
    %50 = tpu.matmul %45, %0, %cst_15 {dimension_numbers = #tpu.dot_dimension_numbers<[1], [0], [0], [1], [0, 0, 1, 1], [], []>} : vector<2x64xf32>, vector<64x256xf32>, vector<2x256xf32> -> vector<2x256xf32>
    %51 = arith.index_cast %c2_i32 : i32 to index
    %c0_16 = arith.constant 0 : index
    %c0_17 = arith.constant 0 : index
    %52 = vector.load %arg0[%51, %c0_16, %c0_17] : memref<8x2x256xf32, #tpu.memory_space<vmem>>, vector<1x2x256xf32>
    %53 = vector.shape_cast %52 : vector<1x2x256xf32> to vector<2x256xf32>
    %54 = arith.addf %50, %53 : vector<2x256xf32>
    %55 = math.tanh %54 : vector<2x256xf32>
    %56 = vector.extract_strided_slice %55 {offsets = [0, 0], sizes = [2, 192], strides = [1, 1]} : vector<2x256xf32> to vector<2x192xf32>
    %cst_18 = arith.constant 5.000000e-01 : f32
    %57 = vector.broadcast %cst_18 : f32 to vector<2x192xf32>
    %58 = arith.mulf %57, %56 : vector<2x192xf32>
    %cst_19 = arith.constant 5.000000e-01 : f32
    %59 = vector.broadcast %cst_19 : f32 to vector<2x192xf32>
    %60 = arith.addf %58, %59 : vector<2x192xf32>
    %61 = vector.extract_strided_slice %55 {offsets = [0, 192], sizes = [2, 64], strides = [1, 1]} : vector<2x256xf32> to vector<2x64xf32>
    %62 = vector.extract_strided_slice %60 {offsets = [0, 0], sizes = [2, 64], strides = [1, 1]} : vector<2x192xf32> to vector<2x64xf32>
    %63 = vector.extract_strided_slice %60 {offsets = [0, 64], sizes = [2, 64], strides = [1, 1]} : vector<2x192xf32> to vector<2x64xf32>
    %64 = vector.extract_strided_slice %60 {offsets = [0, 128], sizes = [2, 64], strides = [1, 1]} : vector<2x192xf32> to vector<2x64xf32>
    %65 = arith.mulf %63, %43 : vector<2x64xf32>
    %66 = arith.mulf %62, %61 : vector<2x64xf32>
    %67 = arith.addf %65, %66 : vector<2x64xf32>
    %68 = math.tanh %67 : vector<2x64xf32>
    %69 = arith.mulf %64, %68 : vector<2x64xf32>
    %70 = arith.index_cast %c2_i32 : i32 to index
    %c0_20 = arith.constant 0 : index
    %c0_21 = arith.constant 0 : index
    %71 = vector.load %arg2[%70, %c0_20, %c0_21] : memref<8x2x64xf32, #tpu.memory_space<vmem>>, vector<1x2x64xf32>
    %72 = vector.shape_cast %71 : vector<1x2x64xf32> to vector<2x64xf32>
    %73 = vector.shape_cast %69 : vector<2x64xf32> to vector<1x2x64xf32>
    tpu.vector_store %arg2[%70, %c0_20, %c0_21], %73 {strides = array<i32>} : memref<8x2x64xf32, #tpu.memory_space<vmem>>, vector<1x2x64xf32>,
    %c3_i32 = arith.constant 3 : i32
    %cst_22 = arith.constant dense<0.000000e+00> : vector<2x256xf32>
    %74 = tpu.matmul %69, %0, %cst_22 {dimension_numbers = #tpu.dot_dimension_numbers<[1], [0], [0], [1], [0, 0, 1, 1], [], []>} : vector<2x64xf32>, vector<64x256xf32>, vector<2x256xf32> -> vector<2x256xf32>
    %75 = arith.index_cast %c3_i32 : i32 to index
    %c0_23 = arith.constant 0 : index
    %c0_24 = arith.constant 0 : index
    %76 = vector.load %arg0[%75, %c0_23, %c0_24] : memref<8x2x256xf32, #tpu.memory_space<vmem>>, vector<1x2x256xf32>
    %77 = vector.shape_cast %76 : vector<1x2x256xf32> to vector<2x256xf32>
    %78 = arith.addf %74, %77 : vector<2x256xf32>
    %79 = math.tanh %78 : vector<2x256xf32>
    %80 = vector.extract_strided_slice %79 {offsets = [0, 0], sizes = [2, 192], strides = [1, 1]} : vector<2x256xf32> to vector<2x192xf32>
    %cst_25 = arith.constant 5.000000e-01 : f32
    %81 = vector.broadcast %cst_25 : f32 to vector<2x192xf32>
    %82 = arith.mulf %81, %80 : vector<2x192xf32>
    %cst_26 = arith.constant 5.000000e-01 : f32
    %83 = vector.broadcast %cst_26 : f32 to vector<2x192xf32>
    %84 = arith.addf %82, %83 : vector<2x192xf32>
    %85 = vector.extract_strided_slice %79 {offsets = [0, 192], sizes = [2, 64], strides = [1, 1]} : vector<2x256xf32> to vector<2x64xf32>
    %86 = vector.extract_strided_slice %84 {offsets = [0, 0], sizes = [2, 64], strides = [1, 1]} : vector<2x192xf32> to vector<2x64xf32>
    %87 = vector.extract_strided_slice %84 {offsets = [0, 64], sizes = [2, 64], strides = [1, 1]} : vector<2x192xf32> to vector<2x64xf32>
    %88 = vector.extract_strided_slice %84 {offsets = [0, 128], sizes = [2, 64], strides = [1, 1]} : vector<2x192xf32> to vector<2x64xf32>
    %89 = arith.mulf %87, %67 : vector<2x64xf32>
    %90 = arith.mulf %86, %85 : vector<2x64xf32>
    %91 = arith.addf %89, %90 : vector<2x64xf32>
    %92 = math.tanh %91 : vector<2x64xf32>
    %93 = arith.mulf %88, %92 : vector<2x64xf32>
    %94 = arith.index_cast %c3_i32 : i32 to index
    %c0_27 = arith.constant 0 : index
    %c0_28 = arith.constant 0 : index
    %95 = vector.load %arg2[%94, %c0_27, %c0_28] : memref<8x2x64xf32, #tpu.memory_space<vmem>>, vector<1x2x64xf32>
    %96 = vector.shape_cast %95 : vector<1x2x64xf32> to vector<2x64xf32>
    %97 = vector.shape_cast %93 : vector<2x64xf32> to vector<1x2x64xf32>
    tpu.vector_store %arg2[%94, %c0_27, %c0_28], %97 {strides = array<i32>} : memref<8x2x64xf32, #tpu.memory_space<vmem>>, vector<1x2x64xf32>,
    %c4_i32 = arith.constant 4 : i32
    %cst_29 = arith.constant dense<0.000000e+00> : vector<2x256xf32>
    %98 = tpu.matmul %93, %0, %cst_29 {dimension_numbers = #tpu.dot_dimension_numbers<[1], [0], [0], [1], [0, 0, 1, 1], [], []>} : vector<2x64xf32>, vector<64x256xf32>, vector<2x256xf32> -> vector<2x256xf32>
    %99 = arith.index_cast %c4_i32 : i32 to index
    %c0_30 = arith.constant 0 : index
    %c0_31 = arith.constant 0 : index
    %100 = vector.load %arg0[%99, %c0_30, %c0_31] : memref<8x2x256xf32, #tpu.memory_space<vmem>>, vector<1x2x256xf32>
    %101 = vector.shape_cast %100 : vector<1x2x256xf32> to vector<2x256xf32>
    %102 = arith.addf %98, %101 : vector<2x256xf32>
    %103 = math.tanh %102 : vector<2x256xf32>
    %104 = vector.extract_strided_slice %103 {offsets = [0, 0], sizes = [2, 192], strides = [1, 1]} : vector<2x256xf32> to vector<2x192xf32>
    %cst_32 = arith.constant 5.000000e-01 : f32
    %105 = vector.broadcast %cst_32 : f32 to vector<2x192xf32>
    %106 = arith.mulf %105, %104 : vector<2x192xf32>
    %cst_33 = arith.constant 5.000000e-01 : f32
    %107 = vector.broadcast %cst_33 : f32 to vector<2x192xf32>
    %108 = arith.addf %106, %107 : vector<2x192xf32>
    %109 = vector.extract_strided_slice %103 {offsets = [0, 192], sizes = [2, 64], strides = [1, 1]} : vector<2x256xf32> to vector<2x64xf32>
    %110 = vector.extract_strided_slice %108 {offsets = [0, 0], sizes = [2, 64], strides = [1, 1]} : vector<2x192xf32> to vector<2x64xf32>
    %111 = vector.extract_strided_slice %108 {offsets = [0, 64], sizes = [2, 64], strides = [1, 1]} : vector<2x192xf32> to vector<2x64xf32>
    %112 = vector.extract_strided_slice %108 {offsets = [0, 128], sizes = [2, 64], strides = [1, 1]} : vector<2x192xf32> to vector<2x64xf32>
    %113 = arith.mulf %111, %91 : vector<2x64xf32>
    %114 = arith.mulf %110, %109 : vector<2x64xf32>
    %115 = arith.addf %113, %114 : vector<2x64xf32>
    %116 = math.tanh %115 : vector<2x64xf32>
    %117 = arith.mulf %112, %116 : vector<2x64xf32>
    %118 = arith.index_cast %c4_i32 : i32 to index
    %c0_34 = arith.constant 0 : index
    %c0_35 = arith.constant 0 : index
    %119 = vector.load %arg2[%118, %c0_34, %c0_35] : memref<8x2x64xf32, #tpu.memory_space<vmem>>, vector<1x2x64xf32>
    %120 = vector.shape_cast %119 : vector<1x2x64xf32> to vector<2x64xf32>
    %121 = vector.shape_cast %117 : vector<2x64xf32> to vector<1x2x64xf32>
    tpu.vector_store %arg2[%118, %c0_34, %c0_35], %121 {strides = array<i32>} : memref<8x2x64xf32, #tpu.memory_space<vmem>>, vector<1x2x64xf32>,
    %c5_i32 = arith.constant 5 : i32
    %cst_36 = arith.constant dense<0.000000e+00> : vector<2x256xf32>
    %122 = tpu.matmul %117, %0, %cst_36 {dimension_numbers = #tpu.dot_dimension_numbers<[1], [0], [0], [1], [0, 0, 1, 1], [], []>} : vector<2x64xf32>, vector<64x256xf32>, vector<2x256xf32> -> vector<2x256xf32>
    %123 = arith.index_cast %c5_i32 : i32 to index
    %c0_37 = arith.constant 0 : index
    %c0_38 = arith.constant 0 : index
    %124 = vector.load %arg0[%123, %c0_37, %c0_38] : memref<8x2x256xf32, #tpu.memory_space<vmem>>, vector<1x2x256xf32>
    %125 = vector.shape_cast %124 : vector<1x2x256xf32> to vector<2x256xf32>
    %126 = arith.addf %122, %125 : vector<2x256xf32>
    %127 = math.tanh %126 : vector<2x256xf32>
    %128 = vector.extract_strided_slice %127 {offsets = [0, 0], sizes = [2, 192], strides = [1, 1]} : vector<2x256xf32> to vector<2x192xf32>
    %cst_39 = arith.constant 5.000000e-01 : f32
    %129 = vector.broadcast %cst_39 : f32 to vector<2x192xf32>
    %130 = arith.mulf %129, %128 : vector<2x192xf32>
    %cst_40 = arith.constant 5.000000e-01 : f32
    %131 = vector.broadcast %cst_40 : f32 to vector<2x192xf32>
    %132 = arith.addf %130, %131 : vector<2x192xf32>
    %133 = vector.extract_strided_slice %127 {offsets = [0, 192], sizes = [2, 64], strides = [1, 1]} : vector<2x256xf32> to vector<2x64xf32>
    %134 = vector.extract_strided_slice %132 {offsets = [0, 0], sizes = [2, 64], strides = [1, 1]} : vector<2x192xf32> to vector<2x64xf32>
    %135 = vector.extract_strided_slice %132 {offsets = [0, 64], sizes = [2, 64], strides = [1, 1]} : vector<2x192xf32> to vector<2x64xf32>
    %136 = vector.extract_strided_slice %132 {offsets = [0, 128], sizes = [2, 64], strides = [1, 1]} : vector<2x192xf32> to vector<2x64xf32>
    %137 = arith.mulf %135, %115 : vector<2x64xf32>
    %138 = arith.mulf %134, %133 : vector<2x64xf32>
    %139 = arith.addf %137, %138 : vector<2x64xf32>
    %140 = math.tanh %139 : vector<2x64xf32>
    %141 = arith.mulf %136, %140 : vector<2x64xf32>
    %142 = arith.index_cast %c5_i32 : i32 to index
    %c0_41 = arith.constant 0 : index
    %c0_42 = arith.constant 0 : index
    %143 = vector.load %arg2[%142, %c0_41, %c0_42] : memref<8x2x64xf32, #tpu.memory_space<vmem>>, vector<1x2x64xf32>
    %144 = vector.shape_cast %143 : vector<1x2x64xf32> to vector<2x64xf32>
    %145 = vector.shape_cast %141 : vector<2x64xf32> to vector<1x2x64xf32>
    tpu.vector_store %arg2[%142, %c0_41, %c0_42], %145 {strides = array<i32>} : memref<8x2x64xf32, #tpu.memory_space<vmem>>, vector<1x2x64xf32>,
    %c6_i32 = arith.constant 6 : i32
    %cst_43 = arith.constant dense<0.000000e+00> : vector<2x256xf32>
    %146 = tpu.matmul %141, %0, %cst_43 {dimension_numbers = #tpu.dot_dimension_numbers<[1], [0], [0], [1], [0, 0, 1, 1], [], []>} : vector<2x64xf32>, vector<64x256xf32>, vector<2x256xf32> -> vector<2x256xf32>
    %147 = arith.index_cast %c6_i32 : i32 to index
    %c0_44 = arith.constant 0 : index
    %c0_45 = arith.constant 0 : index
    %148 = vector.load %arg0[%147, %c0_44, %c0_45] : memref<8x2x256xf32, #tpu.memory_space<vmem>>, vector<1x2x256xf32>
    %149 = vector.shape_cast %148 : vector<1x2x256xf32> to vector<2x256xf32>
    %150 = arith.addf %146, %149 : vector<2x256xf32>
    %151 = math.tanh %150 : vector<2x256xf32>
    %152 = vector.extract_strided_slice %151 {offsets = [0, 0], sizes = [2, 192], strides = [1, 1]} : vector<2x256xf32> to vector<2x192xf32>
    %cst_46 = arith.constant 5.000000e-01 : f32
    %153 = vector.broadcast %cst_46 : f32 to vector<2x192xf32>
    %154 = arith.mulf %153, %152 : vector<2x192xf32>
    %cst_47 = arith.constant 5.000000e-01 : f32
    %155 = vector.broadcast %cst_47 : f32 to vector<2x192xf32>
    %156 = arith.addf %154, %155 : vector<2x192xf32>
    %157 = vector.extract_strided_slice %151 {offsets = [0, 192], sizes = [2, 64], strides = [1, 1]} : vector<2x256xf32> to vector<2x64xf32>
    %158 = vector.extract_strided_slice %156 {offsets = [0, 0], sizes = [2, 64], strides = [1, 1]} : vector<2x192xf32> to vector<2x64xf32>
    %159 = vector.extract_strided_slice %156 {offsets = [0, 64], sizes = [2, 64], strides = [1, 1]} : vector<2x192xf32> to vector<2x64xf32>
    %160 = vector.extract_strided_slice %156 {offsets = [0, 128], sizes = [2, 64], strides = [1, 1]} : vector<2x192xf32> to vector<2x64xf32>
    %161 = arith.mulf %159, %139 : vector<2x64xf32>
    %162 = arith.mulf %158, %157 : vector<2x64xf32>
    %163 = arith.addf %161, %162 : vector<2x64xf32>
    %164 = math.tanh %163 : vector<2x64xf32>
    %165 = arith.mulf %160, %164 : vector<2x64xf32>
    %166 = arith.index_cast %c6_i32 : i32 to index
    %c0_48 = arith.constant 0 : index
    %c0_49 = arith.constant 0 : index
    %167 = vector.load %arg2[%166, %c0_48, %c0_49] : memref<8x2x64xf32, #tpu.memory_space<vmem>>, vector<1x2x64xf32>
    %168 = vector.shape_cast %167 : vector<1x2x64xf32> to vector<2x64xf32>
    %169 = vector.shape_cast %165 : vector<2x64xf32> to vector<1x2x64xf32>
    tpu.vector_store %arg2[%166, %c0_48, %c0_49], %169 {strides = array<i32>} : memref<8x2x64xf32, #tpu.memory_space<vmem>>, vector<1x2x64xf32>,
    %c7_i32 = arith.constant 7 : i32
    %cst_50 = arith.constant dense<0.000000e+00> : vector<2x256xf32>
    %170 = tpu.matmul %165, %0, %cst_50 {dimension_numbers = #tpu.dot_dimension_numbers<[1], [0], [0], [1], [0, 0, 1, 1], [], []>} : vector<2x64xf32>, vector<64x256xf32>, vector<2x256xf32> -> vector<2x256xf32>
    %171 = arith.index_cast %c7_i32 : i32 to index
    %c0_51 = arith.constant 0 : index
    %c0_52 = arith.constant 0 : index
    %172 = vector.load %arg0[%171, %c0_51, %c0_52] : memref<8x2x256xf32, #tpu.memory_space<vmem>>, vector<1x2x256xf32>
    %173 = vector.shape_cast %172 : vector<1x2x256xf32> to vector<2x256xf32>
    %174 = arith.addf %170, %173 : vector<2x256xf32>
    %175 = math.tanh %174 : vector<2x256xf32>
    %176 = vector.extract_strided_slice %175 {offsets = [0, 0], sizes = [2, 192], strides = [1, 1]} : vector<2x256xf32> to vector<2x192xf32>
    %cst_53 = arith.constant 5.000000e-01 : f32
    %177 = vector.broadcast %cst_53 : f32 to vector<2x192xf32>
    %178 = arith.mulf %177, %176 : vector<2x192xf32>
    %cst_54 = arith.constant 5.000000e-01 : f32
    %179 = vector.broadcast %cst_54 : f32 to vector<2x192xf32>
    %180 = arith.addf %178, %179 : vector<2x192xf32>
    %181 = vector.extract_strided_slice %175 {offsets = [0, 192], sizes = [2, 64], strides = [1, 1]} : vector<2x256xf32> to vector<2x64xf32>
    %182 = vector.extract_strided_slice %180 {offsets = [0, 0], sizes = [2, 64], strides = [1, 1]} : vector<2x192xf32> to vector<2x64xf32>
    %183 = vector.extract_strided_slice %180 {offsets = [0, 64], sizes = [2, 64], strides = [1, 1]} : vector<2x192xf32> to vector<2x64xf32>
    %184 = vector.extract_strided_slice %180 {offsets = [0, 128], sizes = [2, 64], strides = [1, 1]} : vector<2x192xf32> to vector<2x64xf32>
    %185 = arith.mulf %183, %163 : vector<2x64xf32>
    %186 = arith.mulf %182, %181 : vector<2x64xf32>
    %187 = arith.addf %185, %186 : vector<2x64xf32>
    %188 = math.tanh %187 : vector<2x64xf32>
    %189 = arith.mulf %184, %188 : vector<2x64xf32>
    %190 = arith.index_cast %c7_i32 : i32 to index
    %c0_55 = arith.constant 0 : index
    %c0_56 = arith.constant 0 : index
    %191 = vector.load %arg2[%190, %c0_55, %c0_56] : memref<8x2x64xf32, #tpu.memory_space<vmem>>, vector<1x2x64xf32>
    %192 = vector.shape_cast %191 : vector<1x2x64xf32> to vector<2x64xf32>
    %193 = vector.shape_cast %189 : vector<2x64xf32> to vector<1x2x64xf32>
    tpu.vector_store %arg2[%190, %c0_55, %c0_56], %193 {strides = array<i32>} : memref<8x2x64xf32, #tpu.memory_space<vmem>>, vector<1x2x64xf32>,
    %c8_i32 = arith.constant 8 : i32
    %194 = vector.extract_strided_slice %189 {offsets = [0, 0], sizes = [2, 32], strides = [1, 1]} : vector<2x64xf32> to vector<2x32xf32>
    %c0_57 = arith.constant 0 : index
    %c0_58 = arith.constant 0 : index
    %c0_59 = arith.constant 0 : index
    %195 = vector.load %arg3[%c0_57, %c0_58, %c0_59] : memref<2x2x32xf32, #tpu.memory_space<vmem>>, vector<1x2x32xf32>
    %196 = vector.shape_cast %195 : vector<1x2x32xf32> to vector<2x32xf32>
    %197 = vector.shape_cast %194 : vector<2x32xf32> to vector<1x2x32xf32>
    tpu.vector_store %arg3[%c0_57, %c0_58, %c0_59], %197 {strides = array<i32>} : memref<2x2x32xf32, #tpu.memory_space<vmem>>, vector<1x2x32xf32>,
    %198 = vector.extract_strided_slice %189 {offsets = [0, 32], sizes = [2, 32], strides = [1, 1]} : vector<2x64xf32> to vector<2x32xf32>
    %c1 = arith.constant 1 : index
    %c0_60 = arith.constant 0 : index
    %c0_61 = arith.constant 0 : index
    %199 = vector.load %arg3[%c1, %c0_60, %c0_61] : memref<2x2x32xf32, #tpu.memory_space<vmem>>, vector<1x2x32xf32>
    %200 = vector.shape_cast %199 : vector<1x2x32xf32> to vector<2x32xf32>
    %201 = vector.shape_cast %198 : vector<2x32xf32> to vector<1x2x32xf32>
    tpu.vector_store %arg3[%c1, %c0_60, %c0_61], %201 {strides = array<i32>} : memref<2x2x32xf32, #tpu.memory_space<vmem>>, vector<1x2x32xf32>,
    return
  }
}

</mosaic_0001>

<bundles_post_ra>
// kernel: bilstm_encoder.1
= control target key start
LH: loop header
LB: loop body
LE: loop exit
PB: predicated region body
PF: predicated region fallthrough
CT: control target
= control target key end

     0   :  { %v1189_v7 = vmov 0.0   ;;  %s1451_s0 = inlined_call_operand.vmem [shape: f32[8,2,256], index: 0, kind: input, shape index: {}]   ;;  %s1452_s1 = inlined_call_operand.vmem [shape: f32[64,256], index: 1, kind: input, shape index: {}]   ;;  %s1453_s2 = inlined_call_operand.vmem [shape: f32[8,2,64], index: 2, kind: output, shape index: {0}]   ;;  %s1454_s3 = inlined_call_operand.hbm [shape: f32[2,2,32], index: 3, kind: output, shape index: {1}]  }
   0x1   :  { %v15_v0 = vld [vmem:[%s1452_s1 + $0x8] sm:$0xff]  ;;  %v17_v1 = vld [vmem:[%s1452_s1 + $0x18] sm:$0xff]  ;;  %v14_v2 = vld [vmem:[%s1452_s1] sm:$0xff]  ;;  %110 = vmatprep.mubr.f32.mxu0 %v1189_v7  ;;  %222 = vmatprep.mubr.f32.mxu1 %v1189_v7 }
   0x2   :  { %v1224_v3 = vpack.c.bf16 %v17_v1, %v15_v0  ;;  %v16_v4 = vld [vmem:[%s1452_s1 + $0x10] sm:$0xff]  ;;  %v19_v5 = vld [vmem:[%s1452_s1 + $0x28] sm:$0xff]  ;;  %v21_v6 = vld [vmem:[%s1452_s1 + $0x38] sm:$0xff] }
   0x3   :  { %v1237_v8 = vpack.c.bf16 %v16_v4, %v14_v2  ;;  %v1239_v9 = vpack.c.bf16 %v21_v6, %v19_v5  ;;  %v18_v10 = vld [vmem:[%s1452_s1 + $0x20] sm:$0xff]  ;;  %v20_v11 = vld [vmem:[%s1452_s1 + $0x30] sm:$0xff]  ;;  %v23_v12 = vld [vmem:[%s1452_s1 + $0x48] sm:$0xff] }
   0x4   :  { %984 = vmatprep.subr.bf16.mxu0 %v1224_v3  ;;  %v25_v13 = vld [vmem:[%s1452_s1 + $0x58] sm:$0xff]  ;;  %1000 = vmatprep.subr.bf16.mxu1 %v1224_v3  ;;  %v1256_v14 = vpack.c.bf16 %v20_v11, %v18_v10  ;;  %v22_v16 = vld [vmem:[%s1452_s1 + $0x40] sm:$0xff]  ;;  %v24_v17 = vld [vmem:[%s1452_s1 + $0x50] sm:$0xff] }
   0x5   :  { %986 = vmatpush1.bf16.msra.mxu0 %v1237_v8  ;;  %1002 = vmatpush1.bf16.msra.mxu1 %v1237_v8  ;;  %v1260_v15 = vpack.c.bf16 %v25_v13, %v23_v12  ;;  %v27_v18 = vld [vmem:[%s1452_s1 + $0x68] sm:$0xff]  ;;  %v29_v19 = vld [vmem:[%s1452_s1 + $0x78] sm:$0xff] }
   0x6   :  { %988 = vmatprep.subr.bf16.mxu0 %v1239_v9  ;;  %1004 = vmatprep.subr.bf16.mxu1 %v1239_v9 }
   0x7   :  { %9 = vsyncpa [#allocation3], 0  ;;  %v1276_v20 = vpack.c.bf16 %v24_v17, %v22_v16  ;;  %v1280_v21 = vpack.c.bf16 %v29_v19, %v27_v18  ;;  %v26_v22 = vld [vmem:[%s1452_s1 + $0x60] sm:$0xff]  ;;  %v28_v23 = vld [vmem:[%s1452_s1 + $0x70] sm:$0xff]  ;;  %s1190_s18 = smov 64   ;;  %vm140_vm0 = vcmask 517120  }
   0x8   :  { %v1290_v24 = vpack.c.bf16 %v28_v23, %v26_v22  ;;  %v954_v25 = vld.sshfl [vmem:[%s1451_s0] sm:$0x33 pattern:$0x76325410]  ;;  %vm42_vm1 = vcmask 523264   ;;  %vm926_vm2 = vcmask 254976  }
   0x9   :  { %990 = vmatpush1.bf16.msra.mxu0 %v1256_v14  ;;  %1006 = vmatpush1.bf16.msra.mxu1 %v1256_v14  ;;  %v39_v26 = vcombine.high %v954_v25, %v954_v25  ;;  %v956_v45 = vld.sshfl [vmem:[%s1451_s0 + $0x4] sm:$0x33 pattern:$0x76325410]  ;;  %s1191_s21 = smov 96   ;;  %s1192_s22 = smov [#allocation2]  }
   0xa   :  { %992 = vmatprep.subr.bf16.mxu0 %v1260_v15  ;;  %1008 = vmatprep.subr.bf16.mxu1 %v1260_v15  ;;  %v152_v46 = vcombine.high %v956_v45, %v956_v45  ;;  %v960_v1 = vld.sshfl [vmem:[%s1451_s0 + $0x8] sm:$0x33 pattern:$0x76325410]  ;;  %s941_s23 = sshll.u32 %s1192_s22, 4  ;;  %s942_s23 = int_to_ptr.vmem [resolvable:$true] %s941_s23 }
   0xb   :  { %v264_v2 = vcombine.high %v960_v1, %v960_v1  ;;  %s1165_s24 = scalar_lea.vmem %s942_s23, 64  ;;  %p1170_p1 = scmp.lt.s32.totalorder %s942_s23, %s942_s23 }
   0xc   :  { %p1166_p0 = scmp.ne.s32.totalorder %s942_s23, %s1165_s24  ;;  %p1171_p2 = scmp.lt.s32.totalorder %s1165_s24, %s1165_s24 }
   0xd   :  { %994 = vmatpush1.bf16.msra.mxu0 %v1276_v20  ;;  %1010 = vmatpush1.bf16.msra.mxu1 %v1276_v20 }
   0xe   :  { %996 = vmatprep.subr.bf16.mxu0 %v1280_v21  ;;  %1012 = vmatprep.subr.bf16.mxu1 %v1280_v21  ;;  %p1172_p3 = por %p1171_p2, %p1170_p1 }
  0x10   :  { %p1173_p4 = pnand %p1172_p3, %p1166_p0 }
  0x11   :  { %998 = vmatpush1.bf16.msra.mxu0 %v1290_v24  ;;  %1014 = vmatpush1.bf16.msra.mxu1 %v1290_v24 }
  0x12   :  { %1016 = vmatprep.subr.bf16.mxu0 %v1224_v3  ;;  %1032 = vmatprep.subr.bf16.mxu1 %v1224_v3 }
  0x14   :  { %111 = vmatmul.mubr.f32.vlgmr.msra.gmra.mrb[0].mxu0 %v1189_v7 }
  0x15   :  { %1018 = vmatpush1.bf16.msra.mxu0 %v1237_v8  ;;  %334 = vmatprep.mubr.f32.mxu0 %v1189_v7 }
  0x16   :  { %1020 = vmatprep.subr.bf16.mxu0 %v1239_v9 }
  0x19   :  { %1022 = vmatpush1.bf16.msra.mxu0 %v1256_v14 }
  0x1a   :  { %1024 = vmatprep.subr.bf16.mxu0 %v1260_v15 }
  0x1d   :  { %1026 = vmatpush1.bf16.msra.mxu0 %v1276_v20 }
  0x1e   :  { %1028 = vmatprep.subr.bf16.mxu0 %v1280_v21 }
  0x21   :  { %1030 = vmatpush1.bf16.msra.mxu0 %v1290_v24 }
  0x22   :  { %1048 = vmatprep.subr.bf16.mxu0 %v1224_v3 }
  0xe7   :  { %v112_v27 = vpop.f32.mrb[0].mxu0 }
  0xe8   :  { %v114_v28 = vpop.f32.mrb[1].mxu0  ;;  %v113_v31 = vadd.f32 %v954_v25, %v112_v27 }
  0xe9   :  { %v115_v29 = vadd.f32 %v114_v28, %v39_v26 }
  0xeb   :  { %1117 = vtanh.f32 %v115_v29 }
  0xec   :  { %1119 = vtanh.f32 %v113_v31 }
  0xf5   :  { %v1118_v30 = vpop.eup %1117 }
  0xf6   :  { %125 = vrot.lane.b32.xlu0 %v1118_v30, %s1190_s18  ;;  %v1120_v32 = vpop.eup %1119  ;;  %v120_v41 = vmul.f32 0.5, %v1118_v30  ;;  %v964_v30 = vld.sshfl [vmem:[%s1451_s0 + $0xc] sm:$0x33 pattern:$0x76325410] }
  0xf7   :  { %v119_v33 = vmul.f32 0.5, %v1120_v32  ;;  %v376_v31 = vcombine.high %v964_v30, %v964_v30 }
  0xf8   :  { %v122_v42 = vadd.f32 0.5, %v120_v41 }
  0xf9   :  { %v121_v34 = vadd.f32 0.5, %v119_v33 }
  0xfb   :  { %v123_v37 = vmul.f32 0.0, %v121_v34 }
 0x168   :  { %v126_v35 = vpop.permute.xlu0 %125 }
 0x169   :  { %v128_v36 = vmul.f32 %v126_v35, %v121_v34 }
 0x16b   :  { %130 = vrot.lane.b32.xlu0 %v128_v36, %s1190_s18 }
 0x1dd   :  { %v131_v38 = vpop.permute.xlu0 %130 }
 0x1de   :  { %v133_v39 = vadd.f32 %v131_v38, %v123_v37 }
 0x1e0   :  { %1121 = vtanh.f32 %v133_v39 }
 0x1ea   :  { %v1122_v40 = vpop.eup %1121 }
 0x1eb   :  { %136 = vrot.lane.b32.xlu1 %v1122_v40, %s1190_s18 }
 0x25d   :  { %v137_v43 = vpop.permute.xlu1 %136 }
 0x25e   :  { %v139_v44 = vmul.f32 %v137_v43, %v122_v42 }
 0x260   :  { %141 = vst.msk [vmem:[%s1453_s2] sm:$0x3] %vm140_vm0, %v139_v44  ;;  %957 = vmatmul.mubr.msk.f32.vlgmr.msra.gmra.mrb[0].mxu1 %vm42_vm1, %v139_v44 }
 0x261   :  { %1034 = vmatpush1.bf16.msra.mxu1 %v1237_v8  ;;  %446 = vmatprep.mubr.f32.mxu1 %v1189_v7 }
 0x262   :  { %1036 = vmatprep.subr.bf16.mxu1 %v1239_v9 }
 0x265   :  { %1038 = vmatpush1.bf16.msra.mxu1 %v1256_v14 }
 0x266   :  { %1040 = vmatprep.subr.bf16.mxu1 %v1260_v15 }
 0x269   :  { %1042 = vmatpush1.bf16.msra.mxu1 %v1276_v20 }
 0x26a   :  { %1044 = vmatprep.subr.bf16.mxu1 %v1280_v21 }
 0x26d   :  { %1046 = vmatpush1.bf16.msra.mxu1 %v1290_v24 }
 0x26e   :  { %1064 = vmatprep.subr.bf16.mxu1 %v1224_v3 }
 0x333   :  { %v224_v47 = vpop.f32.mrb[0].mxu1 }
 0x334   :  { %v226_v48 = vpop.f32.mrb[1].mxu1  ;;  %v225_v51 = vadd.f32 %v956_v45, %v224_v47 }
 0x335   :  { %v227_v49 = vadd.f32 %v226_v48, %v152_v46 }
 0x337   :  { %1123 = vtanh.f32 %v227_v49  ;;  %v968_v49 = vld.sshfl [vmem:[%s1451_s0 + $0x10] sm:$0x33 pattern:$0x76325410] }
 0x338   :  { %1125 = vtanh.f32 %v225_v51 }
 0x341   :  { %v1124_v50 = vpop.eup %1123 }
 0x342   :  { %237 = vrot.lane.b32.xlu1 %v1124_v50, %s1190_s18  ;;  %v1126_v52 = vpop.eup %1125  ;;  %v232_v61 = vmul.f32 0.5, %v1124_v50  ;;  %v488_v50 = vcombine.high %v968_v49, %v968_v49 }
 0x343   :  { %v231_v53 = vmul.f32 0.5, %v1126_v52 }
 0x344   :  { %v234_v62 = vadd.f32 0.5, %v232_v61 }
 0x345   :  { %v233_v54 = vadd.f32 0.5, %v231_v53 }
 0x347   :  { %v235_v57 = vmul.f32 %v233_v54, %v133_v39 }
 0x3b4   :  { %v238_v55 = vpop.permute.xlu1 %237 }
 0x3b5   :  { %v240_v56 = vmul.f32 %v238_v55, %v233_v54 }
 0x3b7   :  { %242 = vrot.lane.b32.xlu0 %v240_v56, %s1190_s18 }
 0x429   :  { %v243_v58 = vpop.permute.xlu0 %242 }
 0x42a   :  { %v245_v59 = vadd.f32 %v243_v58, %v235_v57 }
 0x42c   :  { %1127 = vtanh.f32 %v245_v59 }
 0x436   :  { %v1128_v60 = vpop.eup %1127 }
 0x437   :  { %248 = vrot.lane.b32.xlu1 %v1128_v60, %s1190_s18 }
 0x4a9   :  { %v249_v63 = vpop.permute.xlu1 %248 }
 0x4aa   :  { %v251_v0 = vmul.f32 %v249_v63, %v234_v62 }
 0x4ac   :  { %958 = vst.msk [vmem:[%s1453_s2 + $0x2] sm:$0x3] %vm140_vm0, %v251_v0  ;;  %961 = vmatmul.mubr.msk.f32.vlgmr.msra.gmra.mrb[2].mxu0 %vm42_vm1, %v251_v0 }
 0x4ad   :  { %1050 = vmatpush1.bf16.msra.mxu0 %v1237_v8  ;;  %558 = vmatprep.mubr.f32.mxu0 %v1189_v7 }
 0x4ae   :  { %1052 = vmatprep.subr.bf16.mxu0 %v1239_v9 }
 0x4b1   :  { %1054 = vmatpush1.bf16.msra.mxu0 %v1256_v14 }
 0x4b2   :  { %1056 = vmatprep.subr.bf16.mxu0 %v1260_v15 }
 0x4b5   :  { %1058 = vmatpush1.bf16.msra.mxu0 %v1276_v20 }
 0x4b6   :  { %1060 = vmatprep.subr.bf16.mxu0 %v1280_v21 }
 0x4b9   :  { %1062 = vmatpush1.bf16.msra.mxu0 %v1290_v24 }
 0x4ba   :  { %1080 = vmatprep.subr.bf16.mxu0 %v1224_v3 }
 0x57f   :  { %v336_v4 = vpop.f32.mrb[2].mxu0 }
 0x580   :  { %v338_v5 = vpop.f32.mrb[3].mxu0  ;;  %v337_v11 = vadd.f32 %v960_v1, %v336_v4 }
 0x581   :  { %v339_v6 = vadd.f32 %v338_v5, %v264_v2 }
 0x583   :  { %1129 = vtanh.f32 %v339_v6  ;;  %v972_v6 = vld.sshfl [vmem:[%s1451_s0 + $0x14] sm:$0x33 pattern:$0x76325410] }
 0x584   :  { %1131 = vtanh.f32 %v337_v11 }
 0x58d   :  { %v1130_v10 = vpop.eup %1129 }
 0x58e   :  { %349 = vrot.lane.b32.xlu0 %v1130_v10, %s1190_s18  ;;  %v1132_v12 = vpop.eup %1131  ;;  %v344_v26 = vmul.f32 0.5, %v1130_v10  ;;  %v600_v10 = vcombine.high %v972_v6, %v972_v6 }
 0x58f   :  { %v343_v13 = vmul.f32 0.5, %v1132_v12 }
 0x590   :  { %v346_v27 = vadd.f32 0.5, %v344_v26  ;;  %v976_v26 = vld.sshfl [vmem:[%s1451_s0 + $0x18] sm:$0x33 pattern:$0x76325410] }
 0x591   :  { %v345_v16 = vadd.f32 0.5, %v343_v13 }
 0x593   :  { %v347_v19 = vmul.f32 %v345_v16, %v245_v59 }
 0x600   :  { %v350_v17 = vpop.permute.xlu0 %349 }
 0x601   :  { %v352_v18 = vmul.f32 %v350_v17, %v345_v16 }
 0x603   :  { %354 = vrot.lane.b32.xlu1 %v352_v18, %s1190_s18 }
 0x675   :  { %v355_v22 = vpop.permute.xlu1 %354 }
 0x676   :  { %v357_v23 = vadd.f32 %v355_v22, %v347_v19 }
 0x678   :  { %1133 = vtanh.f32 %v357_v23 }
 0x682   :  { %v1134_v25 = vpop.eup %1133 }
 0x683   :  { %360 = vrot.lane.b32.xlu0 %v1134_v25, %s1190_s18 }
 0x6f5   :  { %v361_v28 = vpop.permute.xlu0 %360 }
 0x6f6   :  { %v363_v29 = vmul.f32 %v361_v28, %v346_v27  ;;  %v712_v27 = vcombine.high %v976_v26, %v976_v26 }
 0x6f8   :  { %962 = vst.msk [vmem:[%s1453_s2 + $0x4] sm:$0x3] %vm140_vm0, %v363_v29  ;;  %965 = vmatmul.mubr.msk.f32.vlgmr.msra.gmra.mrb[2].mxu1 %vm42_vm1, %v363_v29 }
 0x6f9   :  { %1066 = vmatpush1.bf16.msra.mxu1 %v1237_v8  ;;  %670 = vmatprep.mubr.f32.mxu1 %v1189_v7 }
 0x6fa   :  { %1068 = vmatprep.subr.bf16.mxu1 %v1239_v9 }
 0x6fd   :  { %1070 = vmatpush1.bf16.msra.mxu1 %v1256_v14 }
 0x6fe   :  { %1072 = vmatprep.subr.bf16.mxu1 %v1260_v15 }
 0x701   :  { %1074 = vmatpush1.bf16.msra.mxu1 %v1276_v20 }
 0x702   :  { %1076 = vmatprep.subr.bf16.mxu1 %v1280_v21 }
 0x705   :  { %1078 = vmatpush1.bf16.msra.mxu1 %v1290_v24 }
 0x706   :  { %1096 = vmatprep.subr.bf16.mxu1 %v1224_v3 }
 0x7cb   :  { %v448_v32 = vpop.f32.mrb[2].mxu1 }
 0x7cc   :  { %v450_v33 = vpop.f32.mrb[3].mxu1  ;;  %v449_v36 = vadd.f32 %v964_v30, %v448_v32 }
 0x7cd   :  { %v451_v34 = vadd.f32 %v450_v33, %v376_v31 }
 0x7cf   :  { %1135 = vtanh.f32 %v451_v34 }
 0x7d0   :  { %1137 = vtanh.f32 %v449_v36 }
 0x7d9   :  { %v1136_v35 = vpop.eup %1135 }
 0x7da   :  { %461 = vrot.lane.b32.xlu1 %v1136_v35, %s1190_s18  ;;  %v1138_v37 = vpop.eup %1137  ;;  %v456_v45 = vmul.f32 0.5, %v1136_v35 }
 0x7db   :  { %v455_v38 = vmul.f32 0.5, %v1138_v37 }
 0x7dc   :  { %v458_v46 = vadd.f32 0.5, %v456_v45  ;;  %v980_v45 = vld.sshfl [vmem:[%s1451_s0 + $0x1c] sm:$0x33 pattern:$0x76325410] }
 0x7dd   :  { %v457_v39 = vadd.f32 0.5, %v455_v38 }
 0x7df   :  { %v459_v3 = vmul.f32 %v457_v39, %v357_v23 }
 0x84c   :  { %v462_v40 = vpop.permute.xlu1 %461 }
 0x84d   :  { %v464_v41 = vmul.f32 %v462_v40, %v457_v39 }
 0x84f   :  { %466 = vrot.lane.b32.xlu0 %v464_v41, %s1190_s18 }
 0x8c1   :  { %v467_v42 = vpop.permute.xlu0 %466 }
 0x8c2   :  { %v469_v43 = vadd.f32 %v467_v42, %v459_v3 }
 0x8c4   :  { %1139 = vtanh.f32 %v469_v43 }
 0x8ce   :  { %v1140_v44 = vpop.eup %1139 }
 0x8cf   :  { %472 = vrot.lane.b32.xlu1 %v1140_v44, %s1190_s18 }
 0x941   :  { %v473_v47 = vpop.permute.xlu1 %472 }
 0x942   :  { %v475_v48 = vmul.f32 %v473_v47, %v458_v46  ;;  %v824_v46 = vcombine.high %v980_v45, %v980_v45 }
 0x944   :  { %966 = vst.msk [vmem:[%s1453_s2 + $0x6] sm:$0x3] %vm140_vm0, %v475_v48  ;;  %969 = vmatmul.mubr.msk.f32.vlgmr.msra.gmra.mrb[4].mxu0 %vm42_vm1, %v475_v48 }
 0x945   :  { %1082 = vmatpush1.bf16.msra.mxu0 %v1237_v8  ;;  %782 = vmatprep.mubr.f32.mxu0 %v1189_v7 }
 0x946   :  { %1084 = vmatprep.subr.bf16.mxu0 %v1239_v9 }
 0x949   :  { %1086 = vmatpush1.bf16.msra.mxu0 %v1256_v14 }
 0x94a   :  { %1088 = vmatprep.subr.bf16.mxu0 %v1260_v15 }
 0x94d   :  { %1090 = vmatpush1.bf16.msra.mxu0 %v1276_v20 }
 0x94e   :  { %1092 = vmatprep.subr.bf16.mxu0 %v1280_v21 }
 0x951   :  { %1094 = vmatpush1.bf16.msra.mxu0 %v1290_v24 }
 0xa17   :  { %v560_v51 = vpop.f32.mrb[4].mxu0 }
 0xa18   :  { %v562_v52 = vpop.f32.mrb[5].mxu0  ;;  %v561_v55 = vadd.f32 %v968_v49, %v560_v51 }
 0xa19   :  { %v563_v53 = vadd.f32 %v562_v52, %v488_v50 }
 0xa1b   :  { %1141 = vtanh.f32 %v563_v53 }
 0xa1c   :  { %1143 = vtanh.f32 %v561_v55 }
 0xa25   :  { %v1142_v54 = vpop.eup %1141 }
 0xa26   :  { %573 = vrot.lane.b32.xlu0 %v1142_v54, %s1190_s18  ;;  %v1144_v56 = vpop.eup %1143  ;;  %v568_v1 = vmul.f32 0.5, %v1142_v54 }
 0xa27   :  { %v567_v57 = vmul.f32 0.5, %v1144_v56 }
 0xa28   :  { %v570_v2 = vadd.f32 0.5, %v568_v1 }
 0xa29   :  { %v569_v58 = vadd.f32 0.5, %v567_v57 }
 0xa2b   :  { %v571_v61 = vmul.f32 %v569_v58, %v469_v43 }
 0xa98   :  { %v574_v59 = vpop.permute.xlu0 %573 }
 0xa99   :  { %v576_v60 = vmul.f32 %v574_v59, %v569_v58 }
 0xa9b   :  { %578 = vrot.lane.b32.xlu1 %v576_v60, %s1190_s18 }
 0xb0d   :  { %v579_v62 = vpop.permute.xlu1 %578 }
 0xb0e   :  { %v581_v63 = vadd.f32 %v579_v62, %v571_v61 }
 0xb10   :  { %1145 = vtanh.f32 %v581_v63 }
 0xb1a   :  { %v1146_v0 = vpop.eup %1145 }
 0xb1b   :  { %584 = vrot.lane.b32.xlu0 %v1146_v0, %s1190_s18 }
 0xb8d   :  { %v585_v4 = vpop.permute.xlu0 %584 }
 0xb8e   :  { %v587_v5 = vmul.f32 %v585_v4, %v570_v2 }
 0xb90   :  { %970 = vst.msk [vmem:[%s1453_s2 + $0x8] sm:$0x3] %vm140_vm0, %v587_v5  ;;  %973 = vmatmul.mubr.msk.f32.vlgmr.msra.gmra.mrb[4].mxu1 %vm42_vm1, %v587_v5 }
 0xb91   :  { %1098 = vmatpush1.bf16.msra.mxu1 %v1237_v8  ;;  %894 = vmatprep.mubr.f32.mxu1 %v1189_v7 }
 0xb92   :  { %1100 = vmatprep.subr.bf16.mxu1 %v1239_v9 }
 0xb95   :  { %1102 = vmatpush1.bf16.msra.mxu1 %v1256_v14 }
 0xb96   :  { %1104 = vmatprep.subr.bf16.mxu1 %v1260_v15 }
 0xb99   :  { %1106 = vmatpush1.bf16.msra.mxu1 %v1276_v20 }
 0xb9a   :  { %1108 = vmatprep.subr.bf16.mxu1 %v1280_v21 }
 0xb9d   :  { %1110 = vmatpush1.bf16.msra.mxu1 %v1290_v24 }
 0xc63   :  { %v672_v8 = vpop.f32.mrb[4].mxu1 }
 0xc64   :  { %v674_v11 = vpop.f32.mrb[5].mxu1  ;;  %v673_v14 = vadd.f32 %v972_v6, %v672_v8 }
 0xc65   :  { %v675_v7 = vadd.f32 %v674_v11, %v600_v10 }
 0xc67   :  { %1147 = vtanh.f32 %v675_v7 }
 0xc68   :  { %1149 = vtanh.f32 %v673_v14 }
 0xc71   :  { %v1148_v9 = vpop.eup %1147 }
 0xc72   :  { %685 = vrot.lane.b32.xlu1 %v1148_v9, %s1190_s18  ;;  %v1150_v15 = vpop.eup %1149  ;;  %v680_v19 = vmul.f32 0.5, %v1148_v9 }
 0xc73   :  { %v679_v20 = vmul.f32 0.5, %v1150_v15 }
 0xc74   :  { %v682_v22 = vadd.f32 0.5, %v680_v19 }
 0xc75   :  { %v681_v12 = vadd.f32 0.5, %v679_v20 }
 0xc77   :  { %v683_v24 = vmul.f32 %v681_v12, %v581_v63 }
 0xce4   :  { %v686_v21 = vpop.permute.xlu1 %685 }
 0xce5   :  { %v688_v13 = vmul.f32 %v686_v21, %v681_v12 }
 0xce7   :  { %690 = vrot.lane.b32.xlu0 %v688_v13, %s1190_s18 }
 0xd59   :  { %v691_v16 = vpop.permute.xlu0 %690 }
 0xd5a   :  { %v693_v17 = vadd.f32 %v691_v16, %v683_v24 }
 0xd5c   :  { %1151 = vtanh.f32 %v693_v17 }
 0xd66   :  { %v1152_v18 = vpop.eup %1151 }
 0xd67   :  { %696 = vrot.lane.b32.xlu1 %v1152_v18, %s1190_s18 }
 0xdd9   :  { %v697_v23 = vpop.permute.xlu1 %696 }
 0xdda   :  { %v699_v25 = vmul.f32 %v697_v23, %v682_v22 }
 0xddc   :  { %974 = vst.msk [vmem:[%s1453_s2 + $0xa] sm:$0x3] %vm140_vm0, %v699_v25  ;;  %977 = vmatmul.mubr.msk.f32.vlgmr.msra.gmra.mrb[6].mxu0 %vm42_vm1, %v699_v25 }
 0xeaf   :  { %v784_v28 = vpop.f32.mrb[6].mxu0 }
 0xeb0   :  { %v786_v29 = vpop.f32.mrb[7].mxu0  ;;  %v785_v32 = vadd.f32 %v976_v26, %v784_v28 }
 0xeb1   :  { %v787_v30 = vadd.f32 %v786_v29, %v712_v27 }
 0xeb3   :  { %1153 = vtanh.f32 %v787_v30 }
 0xeb4   :  { %1155 = vtanh.f32 %v785_v32 }
 0xebd   :  { %v1154_v31 = vpop.eup %1153 }
 0xebe   :  { %797 = vrot.lane.b32.xlu0 %v1154_v31, %s1190_s18  ;;  %v1156_v33 = vpop.eup %1155  ;;  %v792_v3 = vmul.f32 0.5, %v1154_v31 }
 0xebf   :  { %v791_v34 = vmul.f32 0.5, %v1156_v33 }
 0xec0   :  { %v794_v42 = vadd.f32 0.5, %v792_v3 }
 0xec1   :  { %v793_v35 = vadd.f32 0.5, %v791_v34 }
 0xec3   :  { %v795_v38 = vmul.f32 %v793_v35, %v693_v17 }
 0xf30   :  { %v798_v36 = vpop.permute.xlu0 %797 }
 0xf31   :  { %v800_v37 = vmul.f32 %v798_v36, %v793_v35 }
 0xf33   :  { %802 = vrot.lane.b32.xlu1 %v800_v37, %s1190_s18 }
 0xfa5   :  { %v803_v39 = vpop.permute.xlu1 %802 }
 0xfa6   :  { %v805_v40 = vadd.f32 %v803_v39, %v795_v38 }
 0xfa8   :  { %1157 = vtanh.f32 %v805_v40 }
 0xfb2   :  { %v1158_v41 = vpop.eup %1157 }
 0xfb3   :  { %808 = vrot.lane.b32.xlu0 %v1158_v41, %s1190_s18 }
0x1025   :  { %v809_v43 = vpop.permute.xlu0 %808 }
0x1026   :  { %v811_v44 = vmul.f32 %v809_v43, %v794_v42 }
0x1028   :  { %978 = vst.msk [vmem:[%s1453_s2 + $0xc] sm:$0x3] %vm140_vm0, %v811_v44  ;;  %981 = vmatmul.mubr.msk.f32.vlgmr.msra.gmra.mrb[6].mxu1 %vm42_vm1, %v811_v44 }
0x10fb   :  { %v896_v47 = vpop.f32.mrb[6].mxu1 }
0x10fc   :  { %v898_v48 = vpop.f32.mrb[7].mxu1  ;;  %v897_v51 = vadd.f32 %v980_v45, %v896_v47 }
0x10fd   :  { %v899_v49 = vadd.f32 %v898_v48, %v824_v46 }
0x10ff   :  { %1159 = vtanh.f32 %v899_v49 }
0x1100   :  { %1161 = vtanh.f32 %v897_v51 }
0x1109   :  { %v1160_v50 = vpop.eup %1159 }
0x110a   :  { %909 = vrot.lane.b32.xlu1 %v1160_v50, %s1190_s18  ;;  %v1162_v52 = vpop.eup %1161  ;;  %v904_v61 = vmul.f32 0.5, %v1160_v50 }
0x110b   :  { %v903_v53 = vmul.f32 0.5, %v1162_v52 }
0x110c   :  { %v906_v62 = vadd.f32 0.5, %v904_v61 }
0x110d   :  { %v905_v54 = vadd.f32 0.5, %v903_v53 }
0x110f   :  { %v907_v57 = vmul.f32 %v905_v54, %v805_v40 }
0x117c   :  { %v910_v55 = vpop.permute.xlu1 %909 }
0x117d   :  { %v912_v56 = vmul.f32 %v910_v55, %v905_v54 }
0x117f   :  { %914 = vrot.lane.b32.xlu0 %v912_v56, %s1190_s18 }
0x11f1   :  { %v915_v58 = vpop.permute.xlu0 %914 }
0x11f2   :  { %v917_v59 = vadd.f32 %v915_v58, %v907_v57 }
0x11f4   :  { %1163 = vtanh.f32 %v917_v59 }
0x11fe   :  { %v1164_v60 = vpop.eup %1163 }
0x11ff   :  { %920 = vrot.lane.b32.xlu1 %v1164_v60, %s1190_s18 }
0x1271   :  { %v921_v63 = vpop.permute.xlu1 %920 }
0x1272   :  { %v923_v0 = vmul.f32 %v921_v63, %v906_v62 }
0x1274   :  { %982 = vst.msk [vmem:[%s1453_s2 + $0xe] sm:$0x3] %vm140_vm0, %v923_v0  ;;  %929 = vrot.lane.b32.xlu0 %v923_v0, %s1191_s21 }
0x1275   :  { %927 = vst.msk [vmem:[#allocation2] sm:$0x3] %vm926_vm2, %v923_v0 }
0x12e6   :  { %v930_v1 = vpop.permute.xlu0 %929 }
0x12e7   :  { %933 = vst.msk [vmem:[#allocation2 + $0x2] sm:$0x3] %vm926_vm2, %v930_v1 }
0x12e8   :  { %1176 = shalt.err (!%p1173_p4)
}
0x12e9   :  { %s1177_s26 = scalar_lea.hbm %s1454_s3, 64 }
0x12ea   :  { %p1178_p5 = scmp.ne.s32.totalorder %s1454_s3, %s1177_s26  ;;  %p1181_p6 = scmp.lt.u32.totalorder %s1177_s26, %s1454_s3 }
0x12ec   :  { %p1183_p7 = pnand %p1181_p6, %p1178_p5 }
0x12ee   :  { %1186 = shalt.err (!%p1183_p7)
}
0x12ef   :  { %s1193_s30 = smov 32   ;;  %s1194_s4 = smov 2  }
0x12f0   :  { %947 = dma.vmem_to_hbm [thread:$0]  %s942_s23, 64, %s1454_s3, [#allocation3], %s1193_s30, %s1193_s30, %s1194_s4  }
0x12f1   :  { %1187 = dma.done.wait [#allocation3], 64  }
0x12f2   :  { %1188 = vsyncadd [#allocation3], 4294967232 }
0x12f3   :  { %953 = vsyncpa [#allocation3], 1 }

</bundles_post_ra>
